<compile_context>
chip_gen: v7x
topology: tpu7x:2x2x1
jax: 0.10.0
libtpu: 0.0.40
codegen_flags: <defaults>
</compile_context>

<pallas_src>
import functools

import jax
import jax.numpy as jnp
from jax.experimental import pallas as pl
from jax.experimental.pallas import tpu as pltpu

EPS = 1e-8  # norm_no_nan clamp on the squared norm


def gvp_kernel(s_ref, v_ref, wh_e_ref, wvh_e_ref, ws_sT_ref, ws_vT_ref, bs_ref,
               sum3_h_ref, sum3_v_ref, rep3_v_ref, s_out_ref, v_out_ref):
    # All blocks are batch-major (rows on sublanes, features on lanes):
    #   s_ref:     (TN, si)        v_ref:     (TN, 3*vi)   [n, j*3+c] = v[n, j, c]
    #   wh_e_ref:  (3*vi, 3*h)  = kron(Wh^T, I3)
    #   wvh_e_ref: (3*vi, 3*vo) = kron((Wv Wh)^T, I3)
    #   ws_sT_ref: (si, so)        ws_vT_ref: (h, so)      bs_ref: (1, so)
    #   sum3_h_ref:(3*h, h)        sum3_v_ref:(3*vo, vo)   sum over the 3 comps
    #   rep3_v_ref:(vo, 3*vo)      repeat each gate value over its 3 comps
    #   s_out_ref: (TN, so)        v_out_ref: (TN, 3*vo)   [n, k*3+c]
    v = v_ref[...]

    # Hidden vector features: all 3 spatial components in one MXU pass.
    vh = jnp.dot(v, wh_e_ref[...], preferred_element_type=jnp.float32)
    # ||vh|| over the spatial axis: sum-of-squares via the (idle) MXU, then sqrt.
    vn = jnp.sqrt(jnp.maximum(
        jnp.dot(vh * vh, sum3_h_ref[...], preferred_element_type=jnp.float32),
        EPS))

    # Scalar path: Ws([s, vn]) + b with the concat replaced by a split matmul.
    s = (jnp.dot(s_ref[...], ws_sT_ref[...], preferred_element_type=jnp.float32)
         + jnp.dot(vn, ws_vT_ref[...], preferred_element_type=jnp.float32)
         + bs_ref[...])
    s_out_ref[...] = jnp.maximum(s, 0.0)          # scalar_act = relu

    # Vector path: Wv(Wh(v)) folded into a single matmul (Wvh precomputed).
    w = jnp.dot(v, wvh_e_ref[...], preferred_element_type=jnp.float32)
    wn = jnp.sqrt(jnp.maximum(
        jnp.dot(w * w, sum3_v_ref[...], preferred_element_type=jnp.float32),
        EPS))
    gate3 = jnp.dot(jax.nn.sigmoid(wn), rep3_v_ref[...],
                    preferred_element_type=jnp.float32)
    v_out_ref[...] = w * gate3


def _round_up(x, m):
    return (x + m - 1) // m * m


def _pick_tile_n(n):
    # Cap at 2048 (safe under v5e's scoped VMEM with the 32 MiB limit below),
    # keep >= 2 grid steps when N allows (v7x megacore sharding), keep the
    # sublane dim a multiple of 8, and never larger than round_up(N, 8).
    half = _round_up(-(-n // 2), 128)
    return max(8, min(2048, half, _round_up(n, 8)))


@functools.partial(jax.jit, static_argnames=("tile_n",))
def gvp_forward(s, v, params, *, tile_n=None):
    """s: (N, si) f32, v: (N, vi, 3) f32 -> (N, so) f32, (N, vo, 3) f32.

    params = (wh, ws, bs, wv) in PyTorch nn.Linear layout:
      wh: (h, vi), ws: (so, si + h), bs: (so,), wv: (vo, h)
    """
    wh, ws, bs, wv = params
    N, si = s.shape
    vi = v.shape[1]
    h = wh.shape[0]
    so = ws.shape[0]
    vo = wv.shape[0]

    if tile_n is None:
        tile_n = _pick_tile_n(N)
    grid_n = (N + tile_n - 1) // tile_n

    f32 = jnp.float32
    eye3 = jnp.eye(3, dtype=f32)
    # Expanded weights so one matmul handles all 3 spatial components without
    # any relayout of v (tiny one-off host-side-sized constants, built per call
    # under jit — negligible).
    wh_e = jnp.kron(wh.T.astype(f32), eye3)                 # (3*vi, 3*h)
    wvh_e = jnp.kron((wv @ wh).T.astype(f32), eye3)         # (3*vi, 3*vo)
    ws_sT = ws[:, :si].T.astype(f32)                        # (si, so)  (cat order [s, vn])
    ws_vT = ws[:, si:].T.astype(f32)                        # (h, so)
    bs2 = bs.reshape(1, so).astype(f32)
    sum3_h = jnp.kron(jnp.eye(h, dtype=f32), jnp.ones((3, 1), f32))    # (3*h, h)
    sum3_v = jnp.kron(jnp.eye(vo, dtype=f32), jnp.ones((3, 1), f32))   # (3*vo, vo)
    rep3_v = jnp.kron(jnp.eye(vo, dtype=f32), jnp.ones((1, 3), f32))   # (vo, 3*vo)

    # Free, contiguous reshape — no HBM copy: [n, j*3+c] = v[n, j, c].
    v2 = v.reshape(N, vi * 3).astype(f32)
    s2 = s.astype(f32)

    s_out, v_out = pl.pallas_call(
        gvp_kernel,
        out_shape=(
            jax.ShapeDtypeStruct((N, so), f32),
            jax.ShapeDtypeStruct((N, 3 * vo), f32),
        ),
        grid_spec=pltpu.PrefetchScalarGridSpec(
            num_scalar_prefetch=0,
            grid=(grid_n,),
            in_specs=[
                pl.BlockSpec((tile_n, si), lambda i: (i, 0)),
                pl.BlockSpec((tile_n, 3 * vi), lambda i: (i, 0)),
                pl.BlockSpec((3 * vi, 3 * h), lambda i: (0, 0)),
                pl.BlockSpec((3 * vi, 3 * vo), lambda i: (0, 0)),
                pl.BlockSpec((si, so), lambda i: (0, 0)),
                pl.BlockSpec((h, so), lambda i: (0, 0)),
                pl.BlockSpec((1, so), lambda i: (0, 0)),
                pl.BlockSpec((3 * h, h), lambda i: (0, 0)),
                pl.BlockSpec((3 * vo, vo), lambda i: (0, 0)),
                pl.BlockSpec((vo, 3 * vo), lambda i: (0, 0)),
            ],
            out_specs=[
                pl.BlockSpec((tile_n, so), lambda i: (i, 0)),
                pl.BlockSpec((tile_n, 3 * vo), lambda i: (i, 0)),
            ],
        ),
        compiler_params=pltpu.CompilerParams(
            dimension_semantics=("parallel",),
            vmem_limit_bytes=32 * 1024 * 1024,
        ),
    )(s2, v2, wh_e, wvh_e, ws_sT, ws_vT, bs2, sum3_h, sum3_v, rep3_v)

    # Free reshape back to the PyTorch (N, vo, 3) layout.
    return s_out, v_out.reshape(N, vo, 3)


def gvp_reference(s, v, params):
    """Pure-JAX mirror of the PyTorch forward, for verification."""
    wh, ws, bs, wv = params
    vt = jnp.swapaxes(v, -1, -2)                        # (N, 3, vi)
    vh = vt @ wh.T                                      # (N, 3, h)
    vn = jnp.sqrt(jnp.maximum(jnp.sum(vh * vh, axis=-2), EPS))
    sc = jnp.concatenate([s, vn], axis=-1) @ ws.T + bs  # (N, so)
    vv = jnp.swapaxes(vh @ wv.T, -1, -2)                # (N, vo, 3)
    norm = jnp.sqrt(jnp.maximum(jnp.sum(vv * vv, -1, keepdims=True), EPS))
    vv = vv * jax.nn.sigmoid(norm)
    sc = jax.nn.relu(sc)
    return sc, vv


if __name__ == "__main__":
    # GVP dims: in_dims=(16, 8), out_dims=(32, 16) -> h_dim = max(8, 16) = 16
    si, vi = 16, 8
    so, vo = 32, 16
    h = max(vi, vo)

    key = jax.random.PRNGKey(0)
    k_s, k_v, k_wh, k_ws, k_bs, k_wv = jax.random.split(key, 6)

    # Parameters in PyTorch nn.Linear layout (y = x @ W^T + b).
    wh = 0.1 * jax.random.normal(k_wh, (h, vi), dtype=jnp.float32)
    ws = 0.1 * jax.random.normal(k_ws, (so, si + h), dtype=jnp.float32)
    bs = 0.01 * jax.random.normal(k_bs, (so,), dtype=jnp.float32)
    wv = 0.1 * jax.random.normal(k_wv, (vo, h), dtype=jnp.float32)
    params = (wh, ws, bs, wv)

    # Case 1: tiny batch, single exact tile (default tile picker).
    # Case 2: non-multiple batch, default tile -> 2 grid steps, partial last block.
    # Case 3: same batch, explicit small tile -> 3 grid steps, partial last block.
    for N, tile_n in ((16, None), (333, None), (333, 128)):
        kk_s, kk_v = jax.random.split(jax.random.fold_in(key, N))
        s_in = jax.random.normal(kk_s, (N, si), dtype=jnp.float32)
        v_in = jax.random.normal(kk_v, (N, vi, 3), dtype=jnp.float32)

        s_out, v_out = gvp_forward(s_in, v_in, params, tile_n=tile_n)
        jax.block_until_ready((s_out, v_out))

        s_ref, v_ref = gvp_reference(s_in, v_in, params)
        assert s_out.shape == (N, so) and v_out.shape == (N, vo, 3)
        # Tolerance covers fp reassociation from the split-Ws matmul and the
        # precombined Wvh = Wv @ Wh.
        assert jnp.allclose(s_out, s_ref, atol=1e-4, rtol=1e-4), \
            float(jnp.max(jnp.abs(s_out - s_ref)))
        assert jnp.allclose(v_out, v_ref, atol=1e-4, rtol=1e-4), \
            float(jnp.max(jnp.abs(v_out - v_ref)))

    print("KERNEL_OK")
</pallas_src>

<mosaic_0001>
module attributes {stable_mosaic.version = 11 : i64} {
  func.func @gvp_kernel(%arg0: i32, %arg1: memref<16x16xf32, #tpu.memory_space<vmem>>, %arg2: memref<16x24xf32, #tpu.memory_space<vmem>>, %arg3: memref<24x48xf32, #tpu.memory_space<vmem>>, %arg4: memref<24x48xf32, #tpu.memory_space<vmem>>, %arg5: memref<16x32xf32, #tpu.memory_space<vmem>>, %arg6: memref<16x32xf32, #tpu.memory_space<vmem>>, %arg7: memref<1x32xf32, #tpu.memory_space<vmem>>, %arg8: memref<48x16xf32, #tpu.memory_space<vmem>>, %arg9: memref<48x16xf32, #tpu.memory_space<vmem>>, %arg10: memref<16x48xf32, #tpu.memory_space<vmem>>, %arg11: memref<16x32xf32, #tpu.memory_space<vmem>>, %arg12: memref<16x48xf32, #tpu.memory_space<vmem>>) attributes {dimension_semantics = [#tpu.dimension_semantics<parallel>], iteration_bounds = array<i64: 1>, scalar_prefetch = 0 : i64, scratch_operands = 0 : i64, tpu.core_type = #tpu.core_type<tc>, window_params = [{transform_indices = @transform_0, window_bounds = array<i64: 16, 16>}, {transform_indices = @transform_1, window_bounds = array<i64: 16, 24>}, {pipeline_mode = #tpu.pipeline_mode<synchronous>, transform_indices = @transform_2, window_bounds = array<i64: 24, 48>}, {pipeline_mode = #tpu.pipeline_mode<synchronous>, transform_indices = @transform_3, window_bounds = array<i64: 24, 48>}, {pipeline_mode = #tpu.pipeline_mode<synchronous>, transform_indices = @transform_4, window_bounds = array<i64: 16, 32>}, {pipeline_mode = #tpu.pipeline_mode<synchronous>, transform_indices = @transform_5, window_bounds = array<i64: 16, 32>}, {pipeline_mode = #tpu.pipeline_mode<synchronous>, transform_indices = @transform_6, window_bounds = array<i64: 1, 32>}, {pipeline_mode = #tpu.pipeline_mode<synchronous>, transform_indices = @transform_7, window_bounds = array<i64: 48, 16>}, {pipeline_mode = #tpu.pipeline_mode<synchronous>, transform_indices = @transform_8, window_bounds = array<i64: 48, 16>}, {pipeline_mode = #tpu.pipeline_mode<synchronous>, transform_indices = @transform_9, window_bounds = array<i64: 16, 48>}, {transform_indices = @transform_10, window_bounds = array<i64: 16, 32>}, {transform_indices = @transform_11, window_bounds = array<i64: 16, 48>}]} {
    %c0 = arith.constant 0 : index
    %c0_0 = arith.constant 0 : index
    %0 = vector.load %arg2[%c0, %c0_0] : memref<16x24xf32, #tpu.memory_space<vmem>>, vector<16x24xf32>
    %c0_1 = arith.constant 0 : index
    %c0_2 = arith.constant 0 : index
    %1 = vector.load %arg3[%c0_1, %c0_2] : memref<24x48xf32, #tpu.memory_space<vmem>>, vector<24x48xf32>
    %cst = arith.constant dense<0.000000e+00> : vector<16x48xf32>
    %2 = tpu.matmul %0, %1, %cst {dimension_numbers = #tpu.dot_dimension_numbers<[1], [0], [0], [1], [0, 0, 1, 1], [], []>} : vector<16x24xf32>, vector<24x48xf32>, vector<16x48xf32> -> vector<16x48xf32>
    %3 = arith.mulf %2, %2 : vector<16x48xf32>
    %c0_3 = arith.constant 0 : index
    %c0_4 = arith.constant 0 : index
    %4 = vector.load %arg8[%c0_3, %c0_4] : memref<48x16xf32, #tpu.memory_space<vmem>>, vector<48x16xf32>
    %cst_5 = arith.constant dense<0.000000e+00> : vector<16x16xf32>
    %5 = tpu.matmul %3, %4, %cst_5 {dimension_numbers = #tpu.dot_dimension_numbers<[1], [0], [0], [1], [0, 0, 1, 1], [], []>} : vector<16x48xf32>, vector<48x16xf32>, vector<16x16xf32> -> vector<16x16xf32>
    %cst_6 = arith.constant 9.99999993E-9 : f32
    %6 = vector.broadcast %cst_6 : f32 to vector<16x16xf32>
    %7 = arith.maximumf %5, %6 : vector<16x16xf32>
    %8 = math.sqrt %7 : vector<16x16xf32>
    %c0_7 = arith.constant 0 : index
    %c0_8 = arith.constant 0 : index
    %9 = vector.load %arg1[%c0_7, %c0_8] : memref<16x16xf32, #tpu.memory_space<vmem>>, vector<16x16xf32>
    %c0_9 = arith.constant 0 : index
    %c0_10 = arith.constant 0 : index
    %10 = vector.load %arg5[%c0_9, %c0_10] : memref<16x32xf32, #tpu.memory_space<vmem>>, vector<16x32xf32>
    %cst_11 = arith.constant dense<0.000000e+00> : vector<16x32xf32>
    %11 = tpu.matmul %9, %10, %cst_11 {dimension_numbers = #tpu.dot_dimension_numbers<[1], [0], [0], [1], [0, 0, 1, 1], [], []>} : vector<16x16xf32>, vector<16x32xf32>, vector<16x32xf32> -> vector<16x32xf32>
    %c0_12 = arith.constant 0 : index
    %c0_13 = arith.constant 0 : index
    %12 = vector.load %arg6[%c0_12, %c0_13] : memref<16x32xf32, #tpu.memory_space<vmem>>, vector<16x32xf32>
    %cst_14 = arith.constant dense<0.000000e+00> : vector<16x32xf32>
    %13 = tpu.matmul %8, %12, %cst_14 {dimension_numbers = #tpu.dot_dimension_numbers<[1], [0], [0], [1], [0, 0, 1, 1], [], []>} : vector<16x16xf32>, vector<16x32xf32>, vector<16x32xf32> -> vector<16x32xf32>
    %14 = arith.addf %11, %13 : vector<16x32xf32>
    %c0_15 = arith.constant 0 : index
    %c0_16 = arith.constant 0 : index
    %15 = vector.load %arg7[%c0_15, %c0_16] : memref<1x32xf32, #tpu.memory_space<vmem>>, vector<1x32xf32>
    %16 = vector.broadcast %15 : vector<1x32xf32> to vector<16x32xf32>
    %17 = arith.addf %14, %16 : vector<16x32xf32>
    %cst_17 = arith.constant 0.000000e+00 : f32
    %18 = vector.broadcast %cst_17 : f32 to vector<16x32xf32>
    %19 = arith.maximumf %17, %18 : vector<16x32xf32>
    %c0_18 = arith.constant 0 : index
    %c0_19 = arith.constant 0 : index
    %20 = vector.load %arg11[%c0_18, %c0_19] : memref<16x32xf32, #tpu.memory_space<vmem>>, vector<16x32xf32>
    tpu.vector_store %arg11[%c0_18, %c0_19], %19 {strides = array<i32>} : memref<16x32xf32, #tpu.memory_space<vmem>>, vector<16x32xf32>,
    %c0_20 = arith.constant 0 : index
    %c0_21 = arith.constant 0 : index
    %21 = vector.load %arg4[%c0_20, %c0_21] : memref<24x48xf32, #tpu.memory_space<vmem>>, vector<24x48xf32>
    %cst_22 = arith.constant dense<0.000000e+00> : vector<16x48xf32>
    %22 = tpu.matmul %0, %21, %cst_22 {dimension_numbers = #tpu.dot_dimension_numbers<[1], [0], [0], [1], [0, 0, 1, 1], [], []>} : vector<16x24xf32>, vector<24x48xf32>, vector<16x48xf32> -> vector<16x48xf32>
    %23 = arith.mulf %22, %22 : vector<16x48xf32>
    %c0_23 = arith.constant 0 : index
    %c0_24 = arith.constant 0 : index
    %24 = vector.load %arg9[%c0_23, %c0_24] : memref<48x16xf32, #tpu.memory_space<vmem>>, vector<48x16xf32>
    %cst_25 = arith.constant dense<0.000000e+00> : vector<16x16xf32>
    %25 = tpu.matmul %23, %24, %cst_25 {dimension_numbers = #tpu.dot_dimension_numbers<[1], [0], [0], [1], [0, 0, 1, 1], [], []>} : vector<16x48xf32>, vector<48x16xf32>, vector<16x16xf32> -> vector<16x16xf32>
    %cst_26 = arith.constant 9.99999993E-9 : f32
    %26 = vector.broadcast %cst_26 : f32 to vector<16x16xf32>
    %27 = arith.maximumf %25, %26 : vector<16x16xf32>
    %28 = math.sqrt %27 : vector<16x16xf32>
    %29 = arith.negf %28 : vector<16x16xf32>
    %30 = math.exp %29 : vector<16x16xf32>
    %cst_27 = arith.constant 1.000000e+00 : f32
    %31 = vector.broadcast %cst_27 : f32 to vector<16x16xf32>
    %32 = arith.addf %31, %30 : vector<16x16xf32>
    %33 = arith.divf %31, %32 : vector<16x16xf32>
    %c0_28 = arith.constant 0 : index
    %c0_29 = arith.constant 0 : index
    %34 = vector.load %arg10[%c0_28, %c0_29] : memref<16x48xf32, #tpu.memory_space<vmem>>, vector<16x48xf32>
    %cst_30 = arith.constant dense<0.000000e+00> : vector<16x48xf32>
    %35 = tpu.matmul %33, %34, %cst_30 {dimension_numbers = #tpu.dot_dimension_numbers<[1], [0], [0], [1], [0, 0, 1, 1], [], []>} : vector<16x16xf32>, vector<16x48xf32>, vector<16x48xf32> -> vector<16x48xf32>
    %36 = arith.mulf %22, %35 : vector<16x48xf32>
    %c0_31 = arith.constant 0 : index
    %c0_32 = arith.constant 0 : index
    %37 = vector.load %arg12[%c0_31, %c0_32] : memref<16x48xf32, #tpu.memory_space<vmem>>, vector<16x48xf32>
    tpu.vector_store %arg12[%c0_31, %c0_32], %36 {strides = array<i32>} : memref<16x48xf32, #tpu.memory_space<vmem>>, vector<16x48xf32>,
    return
  }
  func.func @transform_0(%arg0: i32) -> (i32, i32) {
    %c0_i32 = arith.constant 0 : i32
    %c0_i32_0 = arith.constant 0 : i32
    return %arg0, %c0_i32 : i32, i32
  }
  func.func @transform_1(%arg0: i32) -> (i32, i32) {
    %c0_i32 = arith.constant 0 : i32
    %c0_i32_0 = arith.constant 0 : i32
    return %arg0, %c0_i32 : i32, i32
  }
  func.func @transform_2(%arg0: i32) -> (i32, i32) {
    %c0_i32 = arith.constant 0 : i32
    %c0_i32_0 = arith.constant 0 : i32
    %c0_i32_1 = arith.constant 0 : i32
    return %c0_i32, %c0_i32_0 : i32, i32
  }
  func.func @transform_3(%arg0: i32) -> (i32, i32) {
    %c0_i32 = arith.constant 0 : i32
    %c0_i32_0 = arith.constant 0 : i32
    %c0_i32_1 = arith.constant 0 : i32
    return %c0_i32, %c0_i32_0 : i32, i32
  }
  func.func @transform_4(%arg0: i32) -> (i32, i32) {
    %c0_i32 = arith.constant 0 : i32
    %c0_i32_0 = arith.constant 0 : i32
    %c0_i32_1 = arith.constant 0 : i32
    return %c0_i32, %c0_i32_0 : i32, i32
  }
  func.func @transform_5(%arg0: i32) -> (i32, i32) {
    %c0_i32 = arith.constant 0 : i32
    %c0_i32_0 = arith.constant 0 : i32
    %c0_i32_1 = arith.constant 0 : i32
    return %c0_i32, %c0_i32_0 : i32, i32
  }
  func.func @transform_6(%arg0: i32) -> (i32, i32) {
    %c0_i32 = arith.constant 0 : i32
    %c0_i32_0 = arith.constant 0 : i32
    %c0_i32_1 = arith.constant 0 : i32
    return %c0_i32, %c0_i32_0 : i32, i32
  }
  func.func @transform_7(%arg0: i32) -> (i32, i32) {
    %c0_i32 = arith.constant 0 : i32
    %c0_i32_0 = arith.constant 0 : i32
    %c0_i32_1 = arith.constant 0 : i32
    return %c0_i32, %c0_i32_0 : i32, i32
  }
  func.func @transform_8(%arg0: i32) -> (i32, i32) {
    %c0_i32 = arith.constant 0 : i32
    %c0_i32_0 = arith.constant 0 : i32
    %c0_i32_1 = arith.constant 0 : i32
    return %c0_i32, %c0_i32_0 : i32, i32
  }
  func.func @transform_9(%arg0: i32) -> (i32, i32) {
    %c0_i32 = arith.constant 0 : i32
    %c0_i32_0 = arith.constant 0 : i32
    %c0_i32_1 = arith.constant 0 : i32
    return %c0_i32, %c0_i32_0 : i32, i32
  }
  func.func @transform_10(%arg0: i32) -> (i32, i32) {
    %c0_i32 = arith.constant 0 : i32
    %c0_i32_0 = arith.constant 0 : i32
    return %arg0, %c0_i32 : i32, i32
  }
  func.func @transform_11(%arg0: i32) -> (i32, i32) {
    %c0_i32 = arith.constant 0 : i32
    %c0_i32_0 = arith.constant 0 : i32
    return %arg0, %c0_i32 : i32, i32
  }
}

</mosaic_0001>

<bundles_post_ra>
// kernel: gvp_forward.1
= control target key start
LH: loop header
LB: loop body
LE: loop exit
PB: predicated region body
PF: predicated region fallthrough
CT: control target
= control target key end

     0   :  { %vm43_vm0 = vcmask 195584   ;;  %s1123_s0 = inlined_call_operand.vmem [shape: f32[16,16], index: 0, kind: input, shape index: {}]   ;;  %s1124_s1 = inlined_call_operand.vmem [shape: f32[16,24], index: 1, kind: input, shape index: {}]   ;;  %s1125_s2 = inlined_call_operand.vmem [shape: f32[24,48], index: 2, kind: input, shape index: {}]   ;;  %s1126_s3 = inlined_call_operand.vmem [shape: f32[24,48], index: 3, kind: input, shape index: {}]   ;;  %s1127_s4 = inlined_call_operand.vmem [shape: f32[16,32], index: 4, kind: input, shape index: {}]   ;;  %s1128_s5 = inlined_call_operand.vmem [shape: f32[16,32], index: 5, kind: input, shape index: {}]   ;;  %s1129_s6 = inlined_call_operand.vmem [shape: f32[1,32], index: 6, kind: input, shape index: {}]   ;;  %s1130_s7 = inlined_call_operand.vmem [shape: f32[48,16], index: 7, kind: input, shape index: {}, may-alias: {7,8}]   ;;  %s1131_s8 = inlined_call_operand.vmem [shape: f32[48,16], index: 8, kind: input, shape index: {}, may-alias: {7,8}]   ;;  %s1132_s9 = inlined_call_operand.vmem [shape: f32[16,48], index: 9, kind: input, shape index: {}]   ;;  %s1133_s10 = inlined_call_operand.hbm [shape: f32[16,32], index: 10, kind: output, shape index: {0}]   ;;  %s1134_s11 = inlined_call_operand.vmem [shape: f32[16,48], index: 11, kind: output, shape index: {1}]  }
   0x1   :  { %v40_v0 = vld [vmem:[%s1125_s2] sm:$0xff]  ;;  %v41_v1 = vld [vmem:[%s1125_s2 + $0x8] sm:$0xff]  ;;  %v42_v3 = vld [vmem:[%s1125_s2 + $0x10] sm:$0xff] }
   0x2   :  { %v840_v2 = vpack.c.bf16 %v41_v1, %v40_v0  ;;  %v38_v4 = vld [vmem:[%s1124_s1] sm:$0xff]  ;;  %v128_v6 = vld [vmem:[%s1130_s7 + $0x8] sm:$0xff]  ;;  %v129_v7 = vld [vmem:[%s1130_s7 + $0x10] sm:$0xff] }
   0x3   :  { %v127_v5 = vld [vmem:[%s1130_s7] sm:$0xff]  ;;  %777 = vmatprep.mubr.msk.f32.mxu0 %vm43_vm0, %v38_v4  ;;  %v130_v8 = vld [vmem:[%s1130_s7 + $0x18] sm:$0xff] }
   0x4   :  { %841 = vmatprep.subr.bf16.mxu0 %v840_v2  ;;  %v844_v9 = vpack.c.bf16 %v128_v6, %v127_v5  ;;  %v848_v10 = vpack.c.bf16 %v130_v8, %v129_v7 }
   0x5   :  { %17 = vsyncpa [#allocation3], 0  ;;  %843 = vmatpush3.bf16.msra.mxu0 %v840_v2  ;;  %v39_v11 = vld [vmem:[%s1124_s1 + $0x8] sm:$0xff]  ;;  %v131_v12 = vld [vmem:[%s1130_s7 + $0x20] sm:$0xff]  ;;  %vm133_vm1 = vcmask 392192   ;;  %vm237_vm4 = vcmask 130048  }
   0x6   :  { %775 = vmatprep.subr.mxu0 %v42_v3  ;;  %845 = vmatprep.subr.bf16.mxu1 %v844_v9  ;;  %v132_v13 = vld [vmem:[%s1130_s7 + $0x28] sm:$0xff]  ;;  %v414_v15 = vld [vmem:[%s1126_s3] sm:$0xff]  ;;  %v416_v22 = vld [vmem:[%s1126_s3 + $0x10] sm:$0xff]  ;;  %vm411_vm7 = vcmask 261120  }
   0x7   :  { %847 = vmatpush3.bf16.msra.mxu1 %v844_v9  ;;  %v852_v14 = vpack.c.bf16 %v132_v13, %v131_v12  ;;  %v415_v16 = vld [vmem:[%s1126_s3 + $0x8] sm:$0xff]  ;;  %v235_v23 = vld [vmem:[%s1128_s5] sm:$0xff]  ;;  %v496_v49 = vld [vmem:[%s1131_s8 + $0x10] sm:$0xff] }
   0x8   :  { %849 = vmatprep.subr.bf16.mxu1 %v848_v10  ;;  %v864_v17 = vpack.c.bf16 %v415_v16, %v414_v15  ;;  %v236_v24 = vld [vmem:[%s1128_s5 + $0x8] sm:$0xff]  ;;  %v233_v26 = vld [vmem:[%s1127_s4] sm:$0xff]  ;;  %v497_v50 = vld [vmem:[%s1131_s8 + $0x18] sm:$0xff] }
   0x9   :  { %776 = vmatpush3.msra.mxu0 %v42_v3  ;;  %v856_v25 = vpack.c.bf16 %v236_v24, %v235_v23  ;;  %v234_v27 = vld [vmem:[%s1127_s4 + $0x8] sm:$0xff]  ;;  %v494_v39 = vld [vmem:[%s1131_s8] sm:$0xff]  ;;  %v872_v53 = vpack.c.bf16 %v497_v50, %v496_v49 }
   0xa   :  { %778 = vmatmul.mubr.msk.f32.vlgmr.msra.gmra.mrb[0].mxu0 %vm43_vm0, %v39_v11  ;;  %v860_v28 = vpack.c.bf16 %v234_v27, %v233_v26  ;;  %v495_v40 = vld [vmem:[%s1131_s8 + $0x8] sm:$0xff]  ;;  %v231_v46 = vld [vmem:[%s1123_s0] sm:$0xff] }
   0xb   :  { %851 = vmatpush3.bf16.msra.mxu1 %v848_v10  ;;  %857 = vmatprep.subr.bf16.mxu0 %v856_v25  ;;  %v868_v47 = vpack.c.bf16 %v495_v40, %v494_v39  ;;  %v232_v51 = vld [vmem:[%s1123_s0 + $0x8] sm:$0xff]  ;;  %v498_v54 = vld [vmem:[%s1131_s8 + $0x20] sm:$0xff] }
   0xc   :  { %853 = vmatprep.subr.bf16.mxu1 %v852_v14  ;;  %859 = vmatpush3.bf16.msra.mxu0 %v856_v25  ;;  %v499_v55 = vld [vmem:[%s1131_s8 + $0x28] sm:$0xff]  ;;  %v609_v58 = vld [vmem:[%s1132_s9] sm:$0xff] }
   0xd   :  { %861 = vmatprep.subr.bf16.mxu0 %v860_v28  ;;  %v876_v56 = vpack.c.bf16 %v499_v55, %v498_v54  ;;  %v610_v59 = vld [vmem:[%s1132_s9 + $0x8] sm:$0xff]  ;;  %v724_v61 = vld [vmem:[%s1129_s6] ss:$0 sm:$0xff]  ;;  %s929_s6 = smov [#allocation2]  }
   0xe   :  { %v880_v60 = vpack.c.bf16 %v610_v59, %v609_v58  ;;  %s701_s9 = sshll.u32 %s929_s6, 4  ;;  %s702_s9 = int_to_ptr.vmem [resolvable:$true] %s701_s9 }
   0xf   :  { %855 = vmatpush3.bf16.msra.mxu1 %v852_v14  ;;  %s905_s26 = scalar_lea.vmem %s702_s9, 256  ;;  %p910_p1 = scmp.lt.s32.totalorder %s702_s9, %s702_s9 }
  0x10   :  { %865 = vmatprep.subr.bf16.mxu1 %v864_v17  ;;  %p906_p0 = scmp.ne.s32.totalorder %s702_s9, %s905_s26  ;;  %p911_p2 = scmp.lt.s32.totalorder %s905_s26, %s905_s26 }
  0x12   :  { %p912_p3 = por %p911_p2, %p910_p1 }
  0x14   :  { %p913_p4 = pnand %p912_p3, %p906_p0 }
  0xdd   :  { %v779_v18 = vpop.f32.mrb[0].mxu0 }
  0xde   :  { %v116_v19 = vpop.f32.mrb[1].mxu0  ;;  %v126_v21 = vmul.f32 %v779_v18, %v779_v18 }
  0xdf   :  { %v125_v20 = vmul.f32 %v116_v19, %v116_v19 }
  0xe1   :  { %792 = vmatprep.mubr.msk.f32.mxu1 %vm133_vm1, %v125_v20 }
  0xe2   :  { %793 = vmatmul.mubr.msk.f32.vlgmr.msra.gmra.mrb[0].mxu1 %vm133_vm1, %v126_v21 }
  0xe3   :  { %867 = vmatpush3.bf16.msra.mxu1 %v864_v17  ;;  %815 = vmatprep.mubr.msk.f32.mxu1 %vm43_vm0, %v38_v4 }
  0xe4   :  { %813 = vmatprep.subr.mxu1 %v416_v22 }
  0xe7   :  { %814 = vmatpush3.msra.mxu1 %v416_v22 }
  0xe8   :  { %816 = vmatmul.mubr.msk.f32.vlgmr.msra.gmra.mrb[2].mxu1 %vm43_vm0, %v39_v11  ;;  %881 = vmatprep.subr.bf16.mxu1 %v880_v60 }
  0xe9   :  { %883 = vmatpush3.bf16.msra.mxu1 %v880_v60 }
 0x1b5   :  { %v794_v29 = vpop.f32.mrb[0].mxu1 }
 0x1b6   :  { %v216_v30 = vmax.f32 %v794_v29, 1e-08  ;;  %v206_v31 = vpop.f32.mrb[1].mxu1 }
 0x1b7   :  { %v215_v32 = vmax.f32 %v206_v31, 1e-08 }
 0x1b8   :  { %889 = vrsqrt.f32 %v216_v30  ;;  %vm226_vm2 = vcmp.eq.f32.partialorder %v216_v30, inf  ;;  %v229_v44 = vand.u32 2147483648, %v216_v30  ;;  %vm228_vm6 = vcmp.eq.f32.partialorder %v216_v30, 0.0 }
 0x1b9   :  { %891 = vrsqrt.f32 %v215_v32  ;;  %vm219_vm3 = vcmp.eq.f32.partialorder %v215_v32, inf  ;;  %v222_v41 = vand.u32 2147483648, %v215_v32  ;;  %vm221_vm5 = vcmp.eq.f32.partialorder %v215_v32, 0.0 }
 0x1bb   :  { %v1052_v33 = vpop.f32.mrb[2].mxu1 }
 0x1bc   :  { %v1054_v34 = vpop.f32.mrb[3].mxu1  ;;  %v493_v57 = vmul.f32 %v1052_v33, %v1052_v33 }
 0x1bd   :  { %v492_v52 = vmul.f32 %v1054_v34, %v1054_v34 }
 0x1c2   :  { %v890_v35 = vpop.eup %889 }
 0x1c3   :  { %v892_v36 = vpop.eup %891  ;;  %v225_v37 = vmul.f32 %v890_v35, %v216_v30 }
 0x1c4   :  { %v218_v38 = vmul.f32 %v892_v36, %v215_v32 }
 0x1c5   :  { %v227_v42 = vsel %vm226_vm2, %v216_v30, %v225_v37 }
 0x1c6   :  { %v220_v43 = vsel %vm219_vm3, %v215_v32, %v218_v38  ;;  %v230_v48 = vsel %vm228_vm6, %v229_v44, %v227_v42 }
 0x1c7   :  { %v223_v45 = vsel %vm221_vm5, %v222_v41, %v220_v43 }
 0x1c8   :  { %799 = vmatprep.mubr.msk.f32.mxu0 %vm237_vm4, %v223_v45 }
 0x1c9   :  { %800 = vmatmul.mubr.msk.f32.vlgmr.msra.gmra.mrb[2].mxu0 %vm237_vm4, %v230_v48 }
 0x1ca   :  { %863 = vmatpush3.bf16.msra.mxu0 %v860_v28  ;;  %806 = vmatprep.mubr.msk.f32.mxu0 %vm237_vm4, %v231_v46 }
 0x1cb   :  { %869 = vmatprep.subr.bf16.mxu0 %v868_v47 }
 0x1d1   :  { %807 = vmatmul.mubr.msk.f32.vlgmr.msra.gmra.mrb[2].mxu0 %vm237_vm4, %v232_v51 }
 0x1d2   :  { %871 = vmatpush3.bf16.msra.mxu0 %v868_v47  ;;  %830 = vmatprep.mubr.msk.f32.mxu0 %vm133_vm1, %v492_v52 }
 0x1d3   :  { %873 = vmatprep.subr.bf16.mxu0 %v872_v53 }
 0x1d6   :  { %875 = vmatpush3.bf16.msra.mxu0 %v872_v53 }
 0x1d7   :  { %877 = vmatprep.subr.bf16.mxu0 %v876_v56 }
 0x1da   :  { %879 = vmatpush3.bf16.msra.mxu0 %v876_v56 }
 0x1dd   :  { %831 = vmatmul.mubr.msk.f32.vlgmr.msra.gmra.mrb[4].mxu0 %vm133_vm1, %v493_v57 }
 0x2a4   :  { %v808_v62 = vpop.f32.mrb[2].mxu0 }
 0x2a5   :  { %v408_v63 = vadd.f32 %v808_v62, %v724_v61  ;;  %v391_v0 = vpop.f32.mrb[3].mxu0 }
 0x2a6   :  { %v407_v1 = vadd.f32 %v724_v61, %v391_v0 }
 0x2a7   :  { %v410_v2 = vmax.f32 %v408_v63, 0.0 }
 0x2a8   :  { %v409_v3 = vmax.f32 %v407_v1, 0.0 }
 0x2a9   :  { %413 = vst.msk [vmem:[#allocation2 + $0x8] sm:$0xff] %vm411_vm7, %v410_v2 }
 0x2aa   :  { %412 = vst.msk [vmem:[#allocation2] sm:$0xff] %vm411_vm7, %v409_v3 }
 0x2b0   :  { %v832_v4 = vpop.f32.mrb[4].mxu0 }
 0x2b1   :  { %v582_v5 = vmax.f32 %v832_v4, 1e-08  ;;  %v572_v6 = vpop.f32.mrb[5].mxu0 }
 0x2b2   :  { %v581_v7 = vmax.f32 %v572_v6, 1e-08 }
 0x2b3   :  { %893 = vrsqrt.f32 %v582_v5  ;;  %vm592_vm8 = vcmp.eq.f32.partialorder %v582_v5, inf  ;;  %v595_v11 = vand.u32 2147483648, %v582_v5  ;;  %vm594_vm9 = vcmp.eq.f32.partialorder %v582_v5, 0.0 }
 0x2b4   :  { %895 = vrsqrt.f32 %v581_v7  ;;  %vm585_vm10 = vcmp.eq.f32.partialorder %v581_v7, inf  ;;  %v588_v14 = vand.u32 2147483648, %v581_v7  ;;  %vm587_vm11 = vcmp.eq.f32.partialorder %v581_v7, 0.0 }
 0x2bd   :  { %v894_v8 = vpop.eup %893 }
 0x2be   :  { %v896_v9 = vpop.eup %895  ;;  %v591_v10 = vmul.f32 %v894_v8, %v582_v5 }
 0x2bf   :  { %v584_v12 = vmul.f32 %v896_v9, %v581_v7 }
 0x2c0   :  { %v593_v13 = vsel %vm592_vm8, %v582_v5, %v591_v10 }
 0x2c1   :  { %v596_v15 = vsel %vm594_vm9, %v595_v11, %v593_v13  ;;  %v586_v16 = vsel %vm585_vm10, %v581_v7, %v584_v12 }
 0x2c2   :  { %v730_v17 = vmul.f32 -1.442695, %v596_v15  ;;  %v589_v18 = vsel %vm587_vm11, %v588_v14, %v586_v16 }
 0x2c3   :  { %v729_v19 = vmul.f32 -1.442695, %v589_v18 }
 0x2c4   :  { %897 = vpow2.f32 %v730_v17 }
 0x2c5   :  { %899 = vpow2.f32 %v729_v19 }
 0x2ce   :  { %v898_v20 = vpop.eup %897 }
 0x2cf   :  { %v900_v21 = vpop.eup %899  ;;  %v604_v22 = vadd.f32 1.0, %v898_v20 }
 0x2d0   :  { %v603_v23 = vadd.f32 1.0, %v900_v21 }
 0x2d2   :  { %901 = vrcp.f32 %v603_v23 }
 0x2d3   :  { %903 = vrcp.f32 %v604_v22 }
 0x2dc   :  { %v902_v24 = vpop.eup %901 }
 0x2dd   :  { %v904_v25 = vpop.eup %903  ;;  %837 = vmatprep.mubr.msk.f32.mxu1 %vm237_vm4, %v902_v24 }
 0x2de   :  { %838 = vmatmul.mubr.msk.f32.vlgmr.msra.gmra.mrb[4].mxu1 %vm237_vm4, %v904_v25 }
 0x2df   :  { %916 = shalt.err (!%p913_p4)
}
 0x2e0   :  { %s917_s28 = scalar_lea.hbm %s1133_s10, 256 }
 0x2e1   :  { %p918_p5 = scmp.ne.s32.totalorder %s1133_s10, %s917_s28  ;;  %p921_p6 = scmp.lt.u32.totalorder %s917_s28, %s1133_s10 }
 0x2e3   :  { %p923_p7 = pnand %p921_p6, %p918_p5 }
 0x2e5   :  { %926 = shalt.err (!%p923_p7)
}
 0x2e6   :  { %s930_s12 = smov 128   ;;  %s931_s2 = smov 8  }
 0x2e7   :  { %707 = dma.vmem_to_hbm [thread:$0]  %s702_s9, 256, %s1133_s10, [#allocation3], %s930_s12, %s930_s12, %s931_s2  }
 0x3b1   :  { %v839_v26 = vpop.f32.mrb[4].mxu1 }
 0x3b2   :  { %v693_v27 = vmul.f32 %v839_v26, %v1052_v33  ;;  %v683_v28 = vpop.f32.mrb[5].mxu1 }
 0x3b3   :  { %v692_v29 = vmul.f32 %v683_v28, %v1054_v34 }
 0x3b4   :  { %695 = vst.msk [vmem:[%s1134_s11 + $0x8] sm:$0xff] %vm133_vm1, %v693_v27 }
 0x3b5   :  { %694 = vst.msk [vmem:[%s1134_s11] sm:$0xff] %vm133_vm1, %v692_v29 }
 0x3b6   :  { %927 = dma.done.wait [#allocation3], 256  }
 0x3b7   :  { %928 = vsyncadd [#allocation3], 4294967040 }
 0x3b8   :  { %715 = vsyncpa [#allocation3], 1 }

</bundles_post_ra>
